<compile_context>
chip_gen: v7x
topology: tpu7x:2x2x1
jax: 0.10.0
libtpu: 0.0.40
codegen_flags: <defaults>
</compile_context>

<pallas_src>
import functools

import jax
import jax.numpy as jnp
from jax.experimental import pallas as pl
from jax.experimental.pallas import tpu as pltpu

_LANE = 128
_SUBLANE = 8


def _fused_linear_kernel(seed_ref, x_ref, w_ref, b_ref, o_ref, *scratch,
                         negative_slope, dropout_p, apply_dropout,
                         use_scratch, tm, tn):
    # Hoist ALL grid queries out of pl.when bodies (interpret-mode requirement,
    # also keeps the scalar work at the top of the bundle stream).
    i = pl.program_id(0)
    j = pl.program_id(1)
    k = pl.program_id(2)
    nk = pl.num_programs(2)

    acc_ref = scratch[0] if use_scratch else o_ref

    partial = jnp.dot(x_ref[...], w_ref[...],
                      preferred_element_type=jnp.float32)

    @pl.when(k == 0)
    def _first():
        # First K step: assign (no zero-init pass over the accumulator).
        acc_ref[...] = partial.astype(acc_ref.dtype)

    @pl.when(k > 0)
    def _accumulate():
        acc_ref[...] = acc_ref[...] + partial.astype(acc_ref.dtype)

    @pl.when(k == nk - 1)
    def _epilogue():
        y = acc_ref[...].astype(jnp.float32) + b_ref[...].astype(jnp.float32)
        # LeakyReLU(negative_slope)
        y = jnp.where(y >= 0.0, y, y * negative_slope)
        if apply_dropout:
            # Counter-based PRNG: murmur-style mix of (seed, global row, col).
            # Deterministic per element, independent of tiling, no pltpu.prng_*.
            seed = jnp.asarray(seed_ref[0], jnp.uint32)
            row0 = jnp.asarray(i, jnp.uint32) * jnp.uint32(tm)
            col0 = jnp.asarray(j, jnp.uint32) * jnp.uint32(tn)
            r = (jax.lax.broadcasted_iota(jnp.int32, y.shape, 0)
                 .astype(jnp.uint32) + row0)
            c = (jax.lax.broadcasted_iota(jnp.int32, y.shape, 1)
                 .astype(jnp.uint32) + col0)
            h = ((seed * jnp.uint32(0x9E3779B1))
                 ^ (r * jnp.uint32(0x85EBCA77))
                 ^ (c * jnp.uint32(0xC2B2AE3D)))
            h = h ^ (h >> 16)
            h = h * jnp.uint32(0x7FEB352D)
            h = h ^ (h >> 15)
            h = h * jnp.uint32(0x846CA68B)
            h = h ^ (h >> 16)
            keep_thresh = int(round((1.0 - dropout_p) * float(1 << 24)))
            keep = (h >> 8) < jnp.uint32(keep_thresh)
            y = jnp.where(keep, y * (1.0 / (1.0 - dropout_p)), 0.0)
        o_ref[...] = y.astype(o_ref.dtype)


def _round_up(v, m):
    return (v + m - 1) // m * m


def _pick_tile(dim, preferred, align):
    """Full dim if it already fits; otherwise the largest aligned divisor of
    `dim` <= preferred; otherwise an aligned `preferred` (wrapper zero-pads)."""
    if dim <= preferred:
        return dim
    t = (preferred // align) * align
    while t >= align:
        if dim % t == 0:
            return t
        t -= align
    return (preferred // align) * align


def classifier2_forward(x, w_t, b, *, negative_slope=0.01, dropout_p=0.5,
                        train=False, seed=0, tm=512, tn=1024, tk=512):
    """Fused Linear -> LeakyReLU -> Dropout (semantics of Classifier2.forward).

    x:   (M, K) activations
    w_t: (K, N) weight, pre-transposed vs. PyTorch's (N, K) layout
    b:   (N,)   bias
    """
    M, K = x.shape
    K2, N = w_t.shape
    assert K == K2 and b.shape == (N,)
    out_dtype = x.dtype
    apply_dropout = bool(train) and dropout_p > 0.0

    tm = _pick_tile(M, tm, _SUBLANE)
    tn = _pick_tile(N, tn, _LANE)
    tk = _pick_tile(K, tk, _LANE)

    # v7x has 2 TensorCores: expose >= 2 tiles across the parallel grid axes.
    if pl.cdiv(M, tm) * pl.cdiv(N, tn) < 2 and M >= 2 * _SUBLANE:
        tm = _round_up(pl.cdiv(M, 2), _SUBLANE)

    Mp, Np, Kp = _round_up(M, tm), _round_up(N, tn), _round_up(K, tk)

    # Zero-pad to tile multiples (padding contributes 0 to the matmul; the
    # output is sliced back).  No-op when dims already divide.
    if (Mp, Kp) != (M, K):
        x = jnp.pad(x, ((0, Mp - M), (0, Kp - K)))
    if (Kp, Np) != (K, N):
        w_t = jnp.pad(w_t, ((0, Kp - K), (0, Np - N)))
    b2 = b.reshape(1, N)
    if Np != N:
        b2 = jnp.pad(b2, ((0, 0), (0, Np - N)))

    grid = (Mp // tm, Np // tn, Kp // tk)

    use_scratch = jnp.dtype(out_dtype) != jnp.dtype(jnp.float32)
    scratch_shapes = ([pltpu.VMEM((tm, tn), jnp.float32)]
                      if use_scratch else [])

    seed_arr = jnp.asarray([seed], dtype=jnp.int32)

    kernel = functools.partial(
        _fused_linear_kernel,
        negative_slope=float(negative_slope),
        dropout_p=float(dropout_p),
        apply_dropout=apply_dropout,
        use_scratch=use_scratch,
        tm=tm, tn=tn,
    )

    in_item = jnp.dtype(x.dtype).itemsize
    out_item = jnp.dtype(out_dtype).itemsize

    # VMEM limit from the actual double-buffered tile footprint, capped so it
    # is safe on v7x (64 MiB physical) and leaves headroom everywhere else.
    footprint = (2 * (tm * tk + tk * tn + tn) * in_item
                 + 2 * tm * tn * out_item
                 + (tm * tn * 4 if use_scratch else 0))
    vmem_limit = int(min(max(footprint + (8 << 20), 16 << 20), 48 << 20))

    # bytes_accessed reflects re-streaming: x read N/tn times, w read M/tm times.
    cost = pl.CostEstimate(
        flops=2 * M * N * K + 4 * M * N,
        transcendentals=0,
        bytes_accessed=(M * K * (Np // tn) + K * N * (Mp // tm)
                        + N + M * N) * in_item,
    )

    out = pl.pallas_call(
        kernel,
        out_shape=jax.ShapeDtypeStruct((Mp, Np), out_dtype),
        grid_spec=pltpu.PrefetchScalarGridSpec(
            num_scalar_prefetch=1,
            grid=grid,
            in_specs=[
                pl.BlockSpec((tm, tk), lambda i, j, k, s: (i, k)),
                pl.BlockSpec((tk, tn), lambda i, j, k, s: (k, j)),
                pl.BlockSpec((1, tn), lambda i, j, k, s: (0, j)),
            ],
            out_specs=pl.BlockSpec((tm, tn), lambda i, j, k, s: (i, j)),
            scratch_shapes=scratch_shapes,
        ),
        compiler_params=pltpu.CompilerParams(
            dimension_semantics=("parallel", "parallel", "arbitrary"),
            vmem_limit_bytes=vmem_limit,
        ),
        cost_estimate=cost,
    )(seed_arr, x, w_t, b2)

    if (Mp, Np) != (M, N):
        out = out[:M, :N]
    return out


if __name__ == "__main__":
    key = jax.random.PRNGKey(0)
    kx, kw, kb = jax.random.split(key, 3)

    batch, input_size, output_size = 4, 32, 16
    x = jax.random.normal(kx, (batch, input_size), dtype=jnp.float32)
    # PyTorch nn.Linear stores weight as (out, in); keep it pre-transposed as
    # (in, out) so the MXU matmul needs no in-kernel transpose.
    w_t = 0.1 * jax.random.normal(kw, (input_size, output_size),
                                  dtype=jnp.float32)
    b = 0.1 * jax.random.normal(kb, (output_size,), dtype=jnp.float32)

    # --- eval path (dropout = identity), checked against plain JAX ---------
    out_eval = jax.block_until_ready(
        classifier2_forward(x, w_t, b, train=False))
    ref = jnp.dot(x, w_t, precision=jax.lax.Precision.HIGHEST) + b
    ref = jnp.where(ref >= 0.0, ref, 0.01 * ref)
    assert out_eval.shape == (batch, output_size)
    assert jnp.allclose(out_eval, ref, atol=5e-3, rtol=5e-3)

    # --- train path: dropout(p=0.5) via the in-kernel counter-based PRNG ----
    # Each element must be either dropped (0) or equal to 2x the eval value.
    out_train = jax.block_until_ready(
        classifier2_forward(x, w_t, b, train=True, seed=1234))
    scaled = 2.0 * out_eval
    dropped = jnp.isclose(out_train, 0.0, atol=1e-6)
    kept_ok = jnp.isclose(out_train, scaled, atol=1e-4, rtol=1e-4)
    assert bool(jnp.all(dropped | kept_ok))
    drop_frac = float(jnp.mean(dropped))
    assert 0.05 < drop_frac < 0.95  # ~Bernoulli(0.5) mask

    print("KERNEL_OK")
</pallas_src>

<mosaic_0001>
module attributes {stable_mosaic.version = 11 : i64} {
  func.func @_fused_linear_kernel(%arg0: i32, %arg1: i32, %arg2: i32, %arg3: memref<1xi32, #tpu.memory_space<smem>>, %arg4: memref<4x32xf32, #tpu.memory_space<vmem>>, %arg5: memref<32x16xf32, #tpu.memory_space<vmem>>, %arg6: memref<1x16xf32, #tpu.memory_space<vmem>>, %arg7: memref<4x16xf32, #tpu.memory_space<vmem>>) attributes {dimension_semantics = [#tpu.dimension_semantics<parallel>, #tpu.dimension_semantics<parallel>, #tpu.dimension_semantics<arbitrary>], iteration_bounds = array<i64: 1, 1, 1>, scalar_prefetch = 1 : i64, scratch_operands = 0 : i64, tpu.core_type = #tpu.core_type<tc>, window_params = [{transform_indices = @transform_0, window_bounds = array<i64: 4, 32>}, {transform_indices = @transform_1, window_bounds = array<i64: 32, 16>}, {transform_indices = @transform_2, window_bounds = array<i64: 1, 16>}, {transform_indices = @transform_3, window_bounds = array<i64: 4, 16>}]} {
    %c0 = arith.constant 0 : index
    %c0_0 = arith.constant 0 : index
    %0 = vector.load %arg4[%c0, %c0_0] : memref<4x32xf32, #tpu.memory_space<vmem>>, vector<4x32xf32>
    %c0_1 = arith.constant 0 : index
    %c0_2 = arith.constant 0 : index
    %1 = vector.load %arg5[%c0_1, %c0_2] : memref<32x16xf32, #tpu.memory_space<vmem>>, vector<32x16xf32>
    %cst = arith.constant dense<0.000000e+00> : vector<4x16xf32>
    %2 = tpu.matmul %0, %1, %cst {dimension_numbers = #tpu.dot_dimension_numbers<[1], [0], [0], [1], [0, 0, 1, 1], [], []>} : vector<4x32xf32>, vector<32x16xf32>, vector<4x16xf32> -> vector<4x16xf32>
    %c0_i32 = arith.constant 0 : i32
    %3 = arith.cmpi eq, %arg2, %c0_i32 : i32
    %4 = arith.extui %3 : i1 to i32
    %c0_i32_3 = arith.constant 0 : i32
    %5 = arith.cmpi ne, %4, %c0_i32_3 : i32
    scf.if %5 {
      %c0_8 = arith.constant 0 : index
      %c0_9 = arith.constant 0 : index
      %12 = vector.load %arg7[%c0_8, %c0_9] : memref<4x16xf32, #tpu.memory_space<vmem>>, vector<4x16xf32>
      tpu.vector_store %arg7[%c0_8, %c0_9], %2 {strides = array<i32>} : memref<4x16xf32, #tpu.memory_space<vmem>>, vector<4x16xf32>,
    } else {
    }
    %c0_i32_4 = arith.constant 0 : i32
    %6 = arith.cmpi sgt, %arg2, %c0_i32_4 : i32
    %7 = arith.extui %6 : i1 to i32
    %c0_i32_5 = arith.constant 0 : i32
    %8 = arith.cmpi ne, %7, %c0_i32_5 : i32
    scf.if %8 {
      %c0_8 = arith.constant 0 : index
      %c0_9 = arith.constant 0 : index
      %12 = vector.load %arg7[%c0_8, %c0_9] : memref<4x16xf32, #tpu.memory_space<vmem>>, vector<4x16xf32>
      %13 = arith.addf %12, %2 : vector<4x16xf32>
      %c0_10 = arith.constant 0 : index
      %c0_11 = arith.constant 0 : index
      %14 = vector.load %arg7[%c0_10, %c0_11] : memref<4x16xf32, #tpu.memory_space<vmem>>, vector<4x16xf32>
      tpu.vector_store %arg7[%c0_10, %c0_11], %13 {strides = array<i32>} : memref<4x16xf32, #tpu.memory_space<vmem>>, vector<4x16xf32>,
    } else {
    }
    %c0_i32_6 = arith.constant 0 : i32
    %9 = arith.cmpi eq, %arg2, %c0_i32_6 : i32
    %10 = arith.extui %9 : i1 to i32
    %c0_i32_7 = arith.constant 0 : i32
    %11 = arith.cmpi ne, %10, %c0_i32_7 : i32
    scf.if %11 {
      %c0_8 = arith.constant 0 : index
      %c0_9 = arith.constant 0 : index
      %12 = vector.load %arg7[%c0_8, %c0_9] : memref<4x16xf32, #tpu.memory_space<vmem>>, vector<4x16xf32>
      %c0_10 = arith.constant 0 : index
      %c0_11 = arith.constant 0 : index
      %13 = vector.load %arg6[%c0_10, %c0_11] : memref<1x16xf32, #tpu.memory_space<vmem>>, vector<1x16xf32>
      %14 = vector.broadcast %13 : vector<1x16xf32> to vector<4x16xf32>
      %15 = arith.addf %12, %14 : vector<4x16xf32>
      %cst_12 = arith.constant 0.000000e+00 : f32
      %16 = vector.broadcast %cst_12 : f32 to vector<4x16xf32>
      %17 = arith.cmpf oge, %15, %16 : vector<4x16xf32>
      %cst_13 = arith.constant 0.00999999977 : f32
      %18 = vector.broadcast %cst_13 : f32 to vector<4x16xf32>
      %19 = arith.mulf %15, %18 : vector<4x16xf32>
      %20 = arith.select %17, %15, %19 : vector<4x16xi1>, vector<4x16xf32>
      %c0_14 = arith.constant 0 : index
      %c0_15 = arith.constant 0 : index
      %21 = vector.load %arg7[%c0_14, %c0_15] : memref<4x16xf32, #tpu.memory_space<vmem>>, vector<4x16xf32>
      tpu.vector_store %arg7[%c0_14, %c0_15], %20 {strides = array<i32>} : memref<4x16xf32, #tpu.memory_space<vmem>>, vector<4x16xf32>,
    } else {
    }
    return
  }
  func.func @transform_0(%arg0: i32, %arg1: i32, %arg2: i32, %arg3: memref<1xi32, #tpu.memory_space<smem>>) -> (i32, i32) {
    %c0_i32 = arith.constant 0 : i32
    return %arg0, %arg2 : i32, i32
  }
  func.func @transform_1(%arg0: i32, %arg1: i32, %arg2: i32, %arg3: memref<1xi32, #tpu.memory_space<smem>>) -> (i32, i32) {
    %c0_i32 = arith.constant 0 : i32
    return %arg2, %arg1 : i32, i32
  }
  func.func @transform_2(%arg0: i32, %arg1: i32, %arg2: i32, %arg3: memref<1xi32, #tpu.memory_space<smem>>) -> (i32, i32) {
    %c0_i32 = arith.constant 0 : i32
    %c0_i32_0 = arith.constant 0 : i32
    return %c0_i32, %arg1 : i32, i32
  }
  func.func @transform_3(%arg0: i32, %arg1: i32, %arg2: i32, %arg3: memref<1xi32, #tpu.memory_space<smem>>) -> (i32, i32) {
    %c0_i32 = arith.constant 0 : i32
    return %arg0, %arg1 : i32, i32
  }
}

</mosaic_0001>

<bundles_post_ra>
// kernel: tpu_custom_call.1
= control target key start
LH: loop header
LB: loop body
LE: loop exit
PB: predicated region body
PF: predicated region fallthrough
CT: control target
= control target key end

     0   :  { %v193_v3 = vmov 0.0|0.0   ;;  %vm194_vm0 = vmmov 0   ;;  %v195_v6 = vmov 0.0   ;;  %s252_s0 = inlined_call_operand.<no memory space> [shape: s32[1], index: 0, kind: input, shape index: {}]   ;;  %s253_s1 = inlined_call_operand.vmem [shape: f32[4,32], index: 1, kind: input, shape index: {}]   ;;  %s254_s2 = inlined_call_operand.vmem [shape: f32[32,16], index: 2, kind: input, shape index: {}]   ;;  %s255_s3 = inlined_call_operand.vmem [shape: f32[1,16], index: 3, kind: input, shape index: {}]   ;;  %s256_s4 = inlined_call_operand.hbm [shape: f32[4,16], index: 4, kind: output, shape index: {}]  }
   0x1   :  { %v18_v0 = vld [vmem:[%s254_s2] sm:$0xff]  ;;  %v19_v1 = vld [vmem:[%s254_s2 + $0x8] sm:$0xff]  ;;  %v20_v2 = vld [vmem:[%s254_s2 + $0x10] sm:$0xff]  ;;  %159 = vmatprep.subr.bf16.mxu0 %v193_v3  ;;  %156 = vmatprep.mubr.msk.f32.mxu0 %vm194_vm0, %v195_v6 }
   0x2   :  { %v160_v4 = vpack.c.bf16 %v19_v1, %v18_v0  ;;  %v21_v5 = vld [vmem:[%s254_s2 + $0x18] sm:$0xff] }
   0x3   :  { %10 = vsyncpa [#allocation5], 0  ;;  %v163_v7 = vpack.c.bf16 %v21_v5, %v20_v2  ;;  %v17_v8 = vld [vmem:[%s253_s1] sm:$0xf]  ;;  %vm22_vm1 = vcmask 261120   ;;  %vm100_vm2 = vcmask 125952  }
   0x4   :  { %161 = vmatpush3.bf16.msra.mxu0 %v160_v4  ;;  %v142_v11 = vld [vmem:[%s255_s3] ss:$0 sm:$0xff]  ;;  %s196_s25 = smov [#allocation4]  }
   0x5   :  { %162 = vmatprep.subr.bf16.mxu0 %v193_v3  ;;  %s133_s26 = sshll.u32 %s196_s25, 4  ;;  %s134_s26 = int_to_ptr.vmem [resolvable:$true] %s133_s26 }
   0x6   :  { %s169_s1 = scalar_lea.vmem %s134_s26, 64  ;;  %p174_p1 = scmp.lt.s32.totalorder %s134_s26, %s134_s26 }
   0x7   :  { %p170_p0 = scmp.ne.s32.totalorder %s134_s26, %s169_s1  ;;  %p175_p2 = scmp.lt.s32.totalorder %s169_s1, %s169_s1 }
   0x8   :  { %164 = vmatpush3.bf16.msra.mxu0 %v163_v7 }
   0x9   :  { %p176_p3 = por %p175_p2, %p174_p1 }
   0xb   :  { %157 = vmatmul.mubr.msk.f32.vlgmr.msra.gmra.mrb[0].mxu0 %vm22_vm1, %v17_v8  ;;  %p177_p4 = pnand %p176_p3, %p170_p0 }
  0xde   :  { %v92_v9 = vpop.f32.mrb[0].mxu0 }
  0xdf   :  { %101 = vst.msk [vmem:[#allocation4] sm:$0xf] %vm100_vm2, %v92_v9  ;;  %v158_v10 = vpop.f32.mrb[1].mxu0 }
  0xe6   :  { %v113_v12 = vld [vmem:[#allocation4] sm:$0xf] }
  0xe7   :  { %v121_v13 = vadd.f32 %v142_v11, %v113_v12 }
  0xe9   :  { %vm122_vm3 = vcmp.ge.f32.partialorder %v121_v13, 0.0  ;;  %v123_v14 = vmul.f32 0.01, %v121_v13 }
  0xeb   :  { %v124_v15 = vsel %vm122_vm3, %v121_v13, %v123_v14 }
  0xec   :  { %126 = vst.msk [vmem:[#allocation4] sm:$0xf] %vm100_vm2, %v124_v15 }
  0xed   :  { %180 = shalt.err (!%p177_p4)
}
  0xee   :  { %s181_s3 = scalar_lea.hbm %s256_s4, 64 }
  0xef   :  { %p182_p5 = scmp.ne.s32.totalorder %s256_s4, %s181_s3  ;;  %p185_p6 = scmp.lt.u32.totalorder %s181_s3, %s256_s4 }
  0xf1   :  { %p187_p7 = pnand %p185_p6, %p182_p5 }
  0xf3   :  { %190 = shalt.err (!%p187_p7)
}
  0xf4   :  { %136 = dma.vmem_to_hbm [thread:$0]  %s134_s26, 64, %s256_s4, [#allocation5]  }
  0xf5   :  { %191 = dma.done.wait [#allocation5], 64  }
  0xf6   :  { %192 = vsyncadd [#allocation5], 4294967232 }
  0xf7   :  { %140 = vsyncpa [#allocation5], 1 }

</bundles_post_ra>
